<compile_context>
chip_gen: v7x
topology: tpu7x:2x2x1
jax: 0.10.0
libtpu: 0.0.40
codegen_flags: <defaults>
</compile_context>

<pallas_src>
import functools

import numpy as np

import jax
import jax.numpy as jnp
from jax.experimental import pallas as pl
from jax.experimental.pallas import tpu as pltpu

# ----------------------------------------------------------------------------
# Problem constants (input 2x4x16x16, as implied by the module)
# ----------------------------------------------------------------------------
H = W = 16          # conv1 input spatial
C_IN = 4            # conv1 in channels
C1 = 4              # conv1 out channels
OH1 = OW1 = 8       # conv1 output spatial (k=3, stride=2, pad=1)
C2 = 8              # conv2 out channels
OH2 = OW2 = 6       # conv2 output spatial (k=3, stride=1, pad=0)
KH = KW = 3
LANE = 128          # per-tap output column blocks are padded to this for alignment


def _round_up(x, m):
    return ((x + m - 1) // m) * m


# ----------------------------------------------------------------------------
# Fused Pallas kernel: conv1 + leaky(0.2) + conv2 + leaky(0.1)
# All shapes are derived from the Ref shapes, so the same kernel body handles
# both the per-image (G=1) and batch-in-lanes (G=2) packings.
# ----------------------------------------------------------------------------
def _fused_conv_leaky_kernel(x_ref, r_ref, w1_ref, w2_ref, b1_ref, b2_ref, o_ref):
    l1 = b1_ref.shape[1]              # G * OW1 * C1   (conv1 packed lane width)
    l2 = b2_ref.shape[1]              # G * OW2 * C2   (conv2 packed lane width)
    ts1 = w1_ref.shape[1] // KH       # lane stride of one conv1 tap block (128-aligned)
    ts2 = w2_ref.shape[1] // KH       # lane stride of one conv2 tap block (128-aligned)

    x_cat = x_ref[0]                  # (H, G*C_IN*W) lane-dense input rows

    # (1) stride-2 / pad-1 H taps for all 3 conv1 kernel rows in ONE matmul.
    sel = jnp.dot(r_ref[...], x_cat,
                  preferred_element_type=jnp.float32)            # (KH*OH1, G*C_IN*W)

    # (2) conv1: channel contraction + W taps + stride-2 + pad folded into W1all.
    q1 = jnp.dot(sel, w1_ref[...],
                 preferred_element_type=jnp.float32)              # (24, KH*ts1)

    acc1 = jnp.broadcast_to(b1_ref[...], (OH1, l1))               # bias folded into init
    for i in range(KH):               # aligned (8, l1) tiles, cheap VPU adds
        acc1 = acc1 + q1[i * OH1:(i + 1) * OH1, i * ts1:i * ts1 + l1]
    v4 = jnp.where(acc1 > 0, acc1, acc1 * 0.2)                    # leaky(0.2), stays in VMEM

    # (3) conv2: all 3 kernel rows folded into W2all -> ONE matmul.
    q2 = jnp.dot(v4, w2_ref[...],
                 preferred_element_type=jnp.float32)              # (OH1, KH*ts2)

    acc2 = jnp.broadcast_to(b2_ref[...], (OH2, l2))               # bias folded into init
    for i in range(KH):
        acc2 = acc2 + q2[i:i + OH2, i * ts2:i * ts2 + l2]
    o_ref[0] = jnp.where(acc2 > 0, acc2, acc2 * 0.1)              # leaky(0.1)


# ----------------------------------------------------------------------------
# Host-side packing of the structured matrices (tiny, done under jit)
# ----------------------------------------------------------------------------
def _make_row_select():
    """R[i*OH1 + ho, hi] = 1 iff hi == 2*ho + i - 1 (conv1 H taps; pad via zero rows)."""
    r = np.zeros((KH * OH1, H), np.float32)
    for i in range(KH):
        for ho in range(OH1):
            hi = 2 * ho + i - 1
            if 0 <= hi < H:
                r[i * OH1 + ho, hi] = 1.0
    return r


_ROW_SELECT_NP = _make_row_select()          # (24, 16)


def _pack_w1_single(w1):
    """(C1, C_IN, 3, 3) OIHW -> (KH, C_IN*W, OW1*C1):
       M[i, c*W + w_in, wo*C1 + co] = w1[co, c, i, w_in - 2*wo + 1] (0 outside tap/pad)."""
    ii, rr, ll, oo, cc, jj = [], [], [], [], [], []
    for i in range(KH):
        for c in range(C_IN):
            for wo in range(OW1):
                for j in range(KW):
                    w_in = 2 * wo + j - 1
                    if 0 <= w_in < W:
                        for co in range(C1):
                            ii.append(i); rr.append(c * W + w_in)
                            ll.append(wo * C1 + co)
                            oo.append(co); cc.append(c); jj.append(j)
    idx = (np.asarray(ii), np.asarray(rr), np.asarray(ll))
    vals = w1[np.asarray(oo), np.asarray(cc), np.asarray(ii), np.asarray(jj)]
    return jnp.zeros((KH, C_IN * W, OW1 * C1), jnp.float32).at[idx].set(vals)


def _pack_w2_single(w2):
    """(C2, C1, 3, 3) OIHW -> (KH, OW1*C1, OW2*C2):
       M[i, w1*C1 + c, w2*C2 + co] = w2[co, c, i, w1 - w2] (0 outside tap)."""
    ii, rr, ll, oo, cc, jj = [], [], [], [], [], []
    for i in range(KH):
        for c in range(C1):
            for wo2 in range(OW2):
                for j in range(KW):
                    wo1 = wo2 + j                    # always in [0, OW1)
                    for co in range(C2):
                        ii.append(i); rr.append(wo1 * C1 + c)
                        ll.append(wo2 * C2 + co)
                        oo.append(co); cc.append(c); jj.append(j)
    idx = (np.asarray(ii), np.asarray(rr), np.asarray(ll))
    vals = w2[np.asarray(oo), np.asarray(cc), np.asarray(ii), np.asarray(jj)]
    return jnp.zeros((KH, OW1 * C1, OW2 * C2), jnp.float32).at[idx].set(vals)


def _block_diag_taps(m, g):
    """(KH, r, c) -> (KH, g*r, g*c): per-tap block-diagonal replication over g images."""
    if g == 1:
        return m
    kh, r, c = m.shape
    eye = jnp.eye(g, dtype=m.dtype)
    return (eye[None, :, None, :, None] * m[:, None, :, None, :]).reshape(kh, g * r, g * c)


def _lane_stack_taps(m_taps, tap_stride):
    """(KH, R, L) -> (R, KH*tap_stride): tap i's columns at 128-aligned lane offset i*tap_stride."""
    kh, r, l = m_taps.shape
    padded = jnp.pad(m_taps, ((0, 0), (0, 0), (0, tap_stride - l)))
    return padded.transpose(1, 0, 2).reshape(r, kh * tap_stride)


# ----------------------------------------------------------------------------
# Parameters (matches PyTorch Conv2d default init bounds)
# ----------------------------------------------------------------------------
def init_params(key):
    k1, k2, k3, k4 = jax.random.split(key, 4)
    # conv1: Conv2d(4, 4, 3, stride=2, padding=1)
    fan1 = C_IN * 3 * 3
    bnd1 = 1.0 / float(np.sqrt(fan1))
    w1 = jax.random.uniform(k1, (C1, C_IN, 3, 3), jnp.float32, -bnd1, bnd1)
    b1 = jax.random.uniform(k2, (C1,), jnp.float32, -bnd1, bnd1)
    # conv2: declared Conv2d(8, 8, 3); in_channels adapted to 4 (see TODO above)
    fan2 = C1 * 3 * 3
    bnd2 = 1.0 / float(np.sqrt(fan2))
    w2 = jax.random.uniform(k3, (C2, C1, 3, 3), jnp.float32, -bnd2, bnd2)
    b2 = jax.random.uniform(k4, (C2,), jnp.float32, -bnd2, bnd2)
    return dict(w1=w1, b1=b1, w2=w2, b2=b2)


# ----------------------------------------------------------------------------
# Forward
# ----------------------------------------------------------------------------
def _choose_group(n):
    """Images packed into the lane dimension per grid step.

    Single-TC chips (v5e/v6e): do the whole (even) batch in one grid step.
    2-TC chips (v7x-style): keep one image per step so dimension_semantics=
    ("parallel",) spreads the batch over both TensorCores.
    """
    kind = ""
    try:
        kind = jax.devices()[0].device_kind.lower()
    except Exception:
        pass
    if "7" in kind and n >= 2:     # v7x-style: 2 TensorCores per device
        return 1
    return 2 if (n % 2 == 0 and n >= 2) else 1


@functools.partial(jax.jit, static_argnames=("group",))
def _forward_impl(params, x_nchw, *, group):
    n = x_nchw.shape[0]
    g = group
    assert n % g == 0, (n, g)
    steps = n // g

    # Lane-dense input: (steps, H, g*C_IN*W); lane = img*C_IN*W + c*W + w.
    x_packed = (x_nchw.reshape(steps, g, C_IN, H, W)
                .transpose(0, 3, 1, 2, 4)
                .reshape(steps, H, g * C_IN * W))

    ts1 = _round_up(g * OW1 * C1, LANE)               # 128 for g in {1, 2}
    ts2 = _round_up(g * OW2 * C2, LANE)

    row_sel = jnp.asarray(_ROW_SELECT_NP)                                     # (24, 16)
    w1_all = _lane_stack_taps(
        _block_diag_taps(_pack_w1_single(params["w1"]), g), ts1)              # (g*64, 3*ts1)
    w2_all = _lane_stack_taps(
        _block_diag_taps(_pack_w2_single(params["w2"]), g), ts2)              # (g*32, 3*ts2)
    b1_row = jnp.tile(jnp.tile(params["b1"], OW1), g)[None, :]                # (1, g*32)
    b2_row = jnp.tile(jnp.tile(params["b2"], OW2), g)[None, :]                # (1, g*48)

    out_packed = pl.pallas_call(
        _fused_conv_leaky_kernel,
        out_shape=jax.ShapeDtypeStruct((steps, OH2, g * OW2 * C2), jnp.float32),
        grid=(steps,),
        in_specs=[
            pl.BlockSpec((1, H, g * C_IN * W), lambda b: (b, 0, 0)),          # x (lane-dense)
            pl.BlockSpec((KH * OH1, H), lambda b: (0, 0)),                    # row-select
            pl.BlockSpec((g * C_IN * W, KH * ts1), lambda b: (0, 0)),         # packed w1
            pl.BlockSpec((g * OW1 * C1, KH * ts2), lambda b: (0, 0)),         # packed w2
            pl.BlockSpec((1, g * OW1 * C1), lambda b: (0, 0)),                # bias1 row
            pl.BlockSpec((1, g * OW2 * C2), lambda b: (0, 0)),                # bias2 row
        ],
        out_specs=pl.BlockSpec((1, OH2, g * OW2 * C2), lambda b: (b, 0, 0)),
        compiler_params=pltpu.CompilerParams(
            dimension_semantics=("parallel",)),                               # 2 TCs on v7x
    )(x_packed, row_sel, w1_all, w2_all, b1_row, b2_row)

    # (steps, h2, g*w2*C2+co) -> NCHW (n, C2, 6, 6): tiny layout-only epilogue.
    return (out_packed.reshape(steps, OH2, g, OW2, C2)
            .transpose(0, 2, 4, 1, 3)
            .reshape(n, C2, OH2, OW2))


def model_forward(params, x_nchw):
    return _forward_impl(params, x_nchw, group=_choose_group(x_nchw.shape[0]))


# ----------------------------------------------------------------------------
# Pure-JAX reference (silent correctness check)
# ----------------------------------------------------------------------------
def _ref_forward(params, x_nchw):
    dn = ("NCHW", "OIHW", "NCHW")
    v1 = jax.lax.conv_general_dilated(
        x_nchw, params["w1"], (2, 2), ((1, 1), (1, 1)), dimension_numbers=dn
    ) + params["b1"][None, :, None, None]
    v4 = jnp.where(v1 > 0, v1, v1 * 0.2)
    v5 = jax.lax.conv_general_dilated(
        v4, params["w2"], (1, 1), ((0, 0), (0, 0)), dimension_numbers=dn
    ) + params["b2"][None, :, None, None]
    return jnp.where(v5 > 0, v5, v5 * 0.1)


if __name__ == "__main__":
    key = jax.random.PRNGKey(0)
    pkey, xkey = jax.random.split(key)
    params = init_params(pkey)

    # input: batch=2, channels=4, spatial=16x16 (NCHW, like PyTorch)
    x = jax.random.normal(xkey, (2, 4, 16, 16), jnp.float32)

    out = jax.block_until_ready(model_forward(params, x))

    ref = _ref_forward(params, x)
    assert out.shape == (2, 8, 6, 6), out.shape
    assert jnp.allclose(out, ref, atol=1e-4, rtol=1e-4), "mismatch vs reference"

    print("KERNEL_OK")
</pallas_src>

<mosaic_0001>
module attributes {stable_mosaic.version = 11 : i64} {
  func.func @_fused_conv_leaky_kernel(%arg0: i32, %arg1: memref<1x16x128xf32, #tpu.memory_space<vmem>>, %arg2: memref<24x16xf32, #tpu.memory_space<vmem>>, %arg3: memref<128x384xf32, #tpu.memory_space<vmem>>, %arg4: memref<64x384xf32, #tpu.memory_space<vmem>>, %arg5: memref<1x64xf32, #tpu.memory_space<vmem>>, %arg6: memref<1x96xf32, #tpu.memory_space<vmem>>, %arg7: memref<1x6x96xf32, #tpu.memory_space<vmem>>) attributes {dimension_semantics = [#tpu.dimension_semantics<parallel>], iteration_bounds = array<i64: 1>, scalar_prefetch = 0 : i64, scratch_operands = 0 : i64, tpu.core_type = #tpu.core_type<tc>, window_params = [{transform_indices = @transform_0, window_bounds = array<i64: 1, 16, 128>}, {pipeline_mode = #tpu.pipeline_mode<synchronous>, transform_indices = @transform_1, window_bounds = array<i64: 24, 16>}, {pipeline_mode = #tpu.pipeline_mode<synchronous>, transform_indices = @transform_2, window_bounds = array<i64: 128, 384>}, {pipeline_mode = #tpu.pipeline_mode<synchronous>, transform_indices = @transform_3, window_bounds = array<i64: 64, 384>}, {pipeline_mode = #tpu.pipeline_mode<synchronous>, transform_indices = @transform_4, window_bounds = array<i64: 1, 64>}, {pipeline_mode = #tpu.pipeline_mode<synchronous>, transform_indices = @transform_5, window_bounds = array<i64: 1, 96>}, {transform_indices = @transform_6, window_bounds = array<i64: 1, 6, 96>}]} {
    %c0 = arith.constant 0 : index
    %c0_0 = arith.constant 0 : index
    %c0_1 = arith.constant 0 : index
    %0 = vector.load %arg1[%c0, %c0_0, %c0_1] : memref<1x16x128xf32, #tpu.memory_space<vmem>>, vector<1x16x128xf32>
    %1 = vector.shape_cast %0 : vector<1x16x128xf32> to vector<16x128xf32>
    %c0_2 = arith.constant 0 : index
    %c0_3 = arith.constant 0 : index
    %2 = vector.load %arg2[%c0_2, %c0_3] : memref<24x16xf32, #tpu.memory_space<vmem>>, vector<24x16xf32>
    %cst = arith.constant dense<0.000000e+00> : vector<24x128xf32>
    %3 = tpu.matmul %2, %1, %cst {dimension_numbers = #tpu.dot_dimension_numbers<[1], [0], [0], [1], [0, 0, 1, 1], [], []>} : vector<24x16xf32>, vector<16x128xf32>, vector<24x128xf32> -> vector<24x128xf32>
    %c0_4 = arith.constant 0 : index
    %c0_5 = arith.constant 0 : index
    %4 = vector.load %arg3[%c0_4, %c0_5] : memref<128x384xf32, #tpu.memory_space<vmem>>, vector<128x384xf32>
    %cst_6 = arith.constant dense<0.000000e+00> : vector<24x384xf32>
    %5 = tpu.matmul %3, %4, %cst_6 {dimension_numbers = #tpu.dot_dimension_numbers<[1], [0], [0], [1], [0, 0, 1, 1], [], []>} : vector<24x128xf32>, vector<128x384xf32>, vector<24x384xf32> -> vector<24x384xf32>
    %c0_7 = arith.constant 0 : index
    %c0_8 = arith.constant 0 : index
    %6 = vector.load %arg5[%c0_7, %c0_8] : memref<1x64xf32, #tpu.memory_space<vmem>>, vector<1x64xf32>
    %7 = vector.shape_cast %6 : vector<1x64xf32> to vector<1x64xf32>
    %8 = vector.broadcast %7 : vector<1x64xf32> to vector<8x64xf32>
    %9 = vector.extract_strided_slice %5 {offsets = [0, 0], sizes = [8, 64], strides = [1, 1]} : vector<24x384xf32> to vector<8x64xf32>
    %10 = arith.addf %8, %9 : vector<8x64xf32>
    %11 = vector.extract_strided_slice %5 {offsets = [8, 128], sizes = [8, 64], strides = [1, 1]} : vector<24x384xf32> to vector<8x64xf32>
    %12 = arith.addf %10, %11 : vector<8x64xf32>
    %13 = vector.extract_strided_slice %5 {offsets = [16, 256], sizes = [8, 64], strides = [1, 1]} : vector<24x384xf32> to vector<8x64xf32>
    %14 = arith.addf %12, %13 : vector<8x64xf32>
    %cst_9 = arith.constant 0.000000e+00 : f32
    %15 = vector.broadcast %cst_9 : f32 to vector<8x64xf32>
    %16 = arith.cmpf ogt, %14, %15 : vector<8x64xf32>
    %cst_10 = arith.constant 2.000000e-01 : f32
    %17 = vector.broadcast %cst_10 : f32 to vector<8x64xf32>
    %18 = arith.mulf %14, %17 : vector<8x64xf32>
    %19 = arith.select %16, %14, %18 : vector<8x64xi1>, vector<8x64xf32>
    %c0_11 = arith.constant 0 : index
    %c0_12 = arith.constant 0 : index
    %20 = vector.load %arg4[%c0_11, %c0_12] : memref<64x384xf32, #tpu.memory_space<vmem>>, vector<64x384xf32>
    %cst_13 = arith.constant dense<0.000000e+00> : vector<8x384xf32>
    %21 = tpu.matmul %19, %20, %cst_13 {dimension_numbers = #tpu.dot_dimension_numbers<[1], [0], [0], [1], [0, 0, 1, 1], [], []>} : vector<8x64xf32>, vector<64x384xf32>, vector<8x384xf32> -> vector<8x384xf32>
    %c0_14 = arith.constant 0 : index
    %c0_15 = arith.constant 0 : index
    %22 = vector.load %arg6[%c0_14, %c0_15] : memref<1x96xf32, #tpu.memory_space<vmem>>, vector<1x96xf32>
    %23 = vector.shape_cast %22 : vector<1x96xf32> to vector<1x96xf32>
    %24 = vector.broadcast %23 : vector<1x96xf32> to vector<6x96xf32>
    %25 = vector.extract_strided_slice %21 {offsets = [0, 0], sizes = [6, 96], strides = [1, 1]} : vector<8x384xf32> to vector<6x96xf32>
    %26 = arith.addf %24, %25 : vector<6x96xf32>
    %27 = vector.extract_strided_slice %21 {offsets = [1, 128], sizes = [6, 96], strides = [1, 1]} : vector<8x384xf32> to vector<6x96xf32>
    %28 = arith.addf %26, %27 : vector<6x96xf32>
    %29 = vector.extract_strided_slice %21 {offsets = [2, 256], sizes = [6, 96], strides = [1, 1]} : vector<8x384xf32> to vector<6x96xf32>
    %30 = arith.addf %28, %29 : vector<6x96xf32>
    %cst_16 = arith.constant 0.000000e+00 : f32
    %31 = vector.broadcast %cst_16 : f32 to vector<6x96xf32>
    %32 = arith.cmpf ogt, %30, %31 : vector<6x96xf32>
    %cst_17 = arith.constant 1.000000e-01 : f32
    %33 = vector.broadcast %cst_17 : f32 to vector<6x96xf32>
    %34 = arith.mulf %30, %33 : vector<6x96xf32>
    %35 = arith.select %32, %30, %34 : vector<6x96xi1>, vector<6x96xf32>
    %c0_18 = arith.constant 0 : index
    %c0_19 = arith.constant 0 : index
    %c0_20 = arith.constant 0 : index
    %36 = vector.load %arg7[%c0_18, %c0_19, %c0_20] : memref<1x6x96xf32, #tpu.memory_space<vmem>>, vector<1x6x96xf32>
    %37 = vector.shape_cast %36 : vector<1x6x96xf32> to vector<6x96xf32>
    %38 = vector.shape_cast %35 : vector<6x96xf32> to vector<1x6x96xf32>
    tpu.vector_store %arg7[%c0_18, %c0_19, %c0_20], %38 {strides = array<i32>} : memref<1x6x96xf32, #tpu.memory_space<vmem>>, vector<1x6x96xf32>,
    return
  }
  func.func @transform_0(%arg0: i32) -> (i32, i32, i32) {
    %c0_i32 = arith.constant 0 : i32
    %c0_i32_0 = arith.constant 0 : i32
    %c0_i32_1 = arith.constant 0 : i32
    return %arg0, %c0_i32, %c0_i32_0 : i32, i32, i32
  }
  func.func @transform_1(%arg0: i32) -> (i32, i32) {
    %c0_i32 = arith.constant 0 : i32
    %c0_i32_0 = arith.constant 0 : i32
    %c0_i32_1 = arith.constant 0 : i32
    return %c0_i32, %c0_i32_0 : i32, i32
  }
  func.func @transform_2(%arg0: i32) -> (i32, i32) {
    %c0_i32 = arith.constant 0 : i32
    %c0_i32_0 = arith.constant 0 : i32
    %c0_i32_1 = arith.constant 0 : i32
    return %c0_i32, %c0_i32_0 : i32, i32
  }
  func.func @transform_3(%arg0: i32) -> (i32, i32) {
    %c0_i32 = arith.constant 0 : i32
    %c0_i32_0 = arith.constant 0 : i32
    %c0_i32_1 = arith.constant 0 : i32
    return %c0_i32, %c0_i32_0 : i32, i32
  }
  func.func @transform_4(%arg0: i32) -> (i32, i32) {
    %c0_i32 = arith.constant 0 : i32
    %c0_i32_0 = arith.constant 0 : i32
    %c0_i32_1 = arith.constant 0 : i32
    return %c0_i32, %c0_i32_0 : i32, i32
  }
  func.func @transform_5(%arg0: i32) -> (i32, i32) {
    %c0_i32 = arith.constant 0 : i32
    %c0_i32_0 = arith.constant 0 : i32
    %c0_i32_1 = arith.constant 0 : i32
    return %c0_i32, %c0_i32_0 : i32, i32
  }
  func.func @transform_6(%arg0: i32) -> (i32, i32, i32) {
    %c0_i32 = arith.constant 0 : i32
    %c0_i32_0 = arith.constant 0 : i32
    %c0_i32_1 = arith.constant 0 : i32
    return %arg0, %c0_i32, %c0_i32_0 : i32, i32, i32
  }
}

</mosaic_0001>

<bundles_post_ra>
// kernel: tile.24
= control target key start
LH: loop header
LB: loop body
LE: loop exit
PB: predicated region body
PF: predicated region fallthrough
CT: control target
= control target key end

     0   :  { %s67_s10 = smov 28   ;;  %s68_s11 = smov 20   ;;  %vm3_vm0 = vcmask 31744   ;;  %vm9_vm1 = vcmask 261344   ;;  %vm15_vm2 = vcmask 228544   ;;  %vm21_vm3 = vcmask 195744   ;;  %s111_s0 = inlined_call_operand.vmem [shape: f32[8,4], index: 0, kind: input, shape index: {}]   ;;  %s112_s1 = inlined_call_operand.vmem [shape: f32[32], index: 1, kind: output, shape index: {}]  }
   0x1   :  { %v53_v0 = vld [vmem:[%s111_s0 + $0x7] sm:$0x1]   ;;  %v55_v1 = vld [vmem:[%s111_s0 + $0x5] sm:$0x1]   ;;  %v54_v2 = vld [vmem:[%s111_s0 + $0x6] sm:$0x1]  }
   0x2   :  { %7 = vrot.lane.b32.xlu0 %v53_v0, %s67_s10  ;;  %19 = vrot.lane.b32.xlu1 %v55_v1, %s68_s11  ;;  %v56_v3 = vld [vmem:[%s111_s0 + $0x4] sm:$0x1]   ;;  %v2_v4 = vld [vmem:[%s111_s0] sm:$0x1]   ;;  %s69_s18 = smov 24   ;;  %s70_s19 = smov 16  }
   0x3   :  { %4 = vst.msk [vmem:[#allocation0] sm:$0x1] %vm3_vm0, %v2_v4   ;;  %v57_v5 = vld [vmem:[%s111_s0 + $0x3] sm:$0x1]   ;;  %v58_v6 = vld [vmem:[%s111_s0 + $0x2] sm:$0x1]  }
   0x4   :  { %s71_s24 = smov 12   ;;  %s72_s25 = smov 8   ;;  %v59_v7 = vld [vmem:[%s111_s0 + $0x1] sm:$0x1]   ;;  %vm27_vm4 = vcmask 162944   ;;  %vm33_vm5 = vcmask 130144  }
   0x5   :  { %s73_s0 = smov 4   ;;  %vm39_vm6 = vcmask 97344   ;;  %vm45_vm7 = vcmask 64544  }
   0x6   :  { %13 = vrot.lane.b32.xlu0 %v54_v2, %s69_s18  ;;  %25 = vrot.lane.b32.xlu1 %v56_v3, %s70_s19 }
   0xa   :  { %31 = vrot.lane.b32.xlu0 %v57_v5, %s71_s24  ;;  %37 = vrot.lane.b32.xlu1 %v58_v6, %s72_s25 }
   0xe   :  { %43 = vrot.lane.b32.xlu0 %v59_v7, %s73_s0 }
  0x74   :  { %v8_v8 = vpop.permute.xlu0 %7   ;;  %v20_v9 = vpop.permute.xlu1 %19  }
  0x75   :  { %10 = vst.msk [vmem:[#allocation0] sm:$0x1] %vm9_vm1, %v8_v8  }
  0x78   :  { %v14_v10 = vpop.permute.xlu0 %13   ;;  %v26_v11 = vpop.permute.xlu1 %25  }
  0x79   :  { %16 = vst.msk [vmem:[#allocation0] sm:$0x1] %vm15_vm2, %v14_v10  }
  0x7a   :  { %22 = vst.msk [vmem:[#allocation0] sm:$0x1] %vm21_vm3, %v20_v9  }
  0x7b   :  { %28 = vst.msk [vmem:[#allocation0] sm:$0x1] %vm27_vm4, %v26_v11  }
  0x7c   :  { %v32_v12 = vpop.permute.xlu0 %31   ;;  %v38_v13 = vpop.permute.xlu1 %37  }
  0x7d   :  { %34 = vst.msk [vmem:[#allocation0] sm:$0x1] %vm33_vm5, %v32_v12  }
  0x7e   :  { %40 = vst.msk [vmem:[#allocation0] sm:$0x1] %vm39_vm6, %v38_v13  }
  0x80   :  { %v44_v14 = vpop.permute.xlu0 %43  }
  0x81   :  { %46 = vst.msk [vmem:[#allocation0] sm:$0x1] %vm45_vm7, %v44_v14  }
  0x88   :  { %v50_v15 = vld [vmem:[#allocation0] sm:$0x1] }
  0x89   :  { %52 = vst [vmem:[%s112_s1] sm:$0x1] %v50_v15 }

// kernel: tile.21
= control target key start
LH: loop header
LB: loop body
LE: loop exit
PB: predicated region body
PF: predicated region fallthrough
CT: control target
= control target key end

     0   :  { %2 = vsyncpa [#allocation1], 0  ;;  %s44_s6 = smov [#allocation0]   ;;  %s70_s0 = inlined_call_operand.hbm [shape: f32[4], index: 0, kind: input, shape index: {}]   ;;  %s71_s1 = inlined_call_operand.vmem [shape: f32[8,4], index: 1, kind: output, shape index: {}]  }
   0x1   :  { %s9_s7 = sshll.u32 %s44_s6, 4  ;;  %s20_s10 = scalar_lea.hbm %s70_s0, 16  ;;  %s10_s7 = int_to_ptr.vmem [resolvable:$true] %s9_s7 }
   0x2   :  { %p21_p0 = scmp.ne.s32.totalorder %s70_s0, %s20_s10  ;;  %p24_p1 = scmp.lt.u32.totalorder %s20_s10, %s70_s0 }
   0x4   :  { %p26_p2 = pnand %p24_p1, %p21_p0 }
   0x6   :  { %29 = shalt.err (!%p26_p2)
}
   0x7   :  { %s30_s15 = scalar_lea.vmem %s10_s7, 16  ;;  %s34_s16 = scalar_lea.vmem %s10_s7, 32 }
   0x8   :  { %p31_p3 = scmp.ne.s32.totalorder %s10_s7, %s30_s15  ;;  %p35_p4 = scmp.lt.s32.totalorder %s10_s7, %s10_s7 }
   0x9   :  { %p36_p5 = scmp.lt.s32.totalorder %s34_s16, %s30_s15 }
   0xb   :  { %p37_p6 = por %p36_p5, %p35_p4 }
   0xd   :  { %p38_p7 = pnand %p37_p6, %p31_p3 }
   0xf   :  { %41 = shalt.err (!%p38_p7)
}
  0x10   :  { %12 = dma.hbm_to_vmem [thread:$0]  %s70_s0, 16, %s10_s7, [#allocation1]  }
  0x11   :  { %42 = dma.done.wait [#allocation1], 16  }
  0x12   :  { %43 = vsyncadd [#allocation1], 4294967280  ;;  %v16_v0 = vld [vmem:[#allocation0] ss:$0 sm:$0xff] }
  0x13   :  { %17 = vst [vmem:[%s71_s1] sm:$0xff] %v16_v0 }
  0x14   :  { %18 = vsyncpa [#allocation1], 1 }

// kernel: tile.25
= control target key start
LH: loop header
LB: loop body
LE: loop exit
PB: predicated region body
PF: predicated region fallthrough
CT: control target
= control target key end

     0   :  { %s22_s0 = inlined_call_operand.vmem [shape: f32[32], index: 0, kind: input, shape index: {}]   ;;  %s23_s1 = inlined_call_operand.vmem [shape: f32[2,32], index: 1, kind: output, shape index: {}]  }
   0x1   :  { %v4_v0 = vld [vmem:[%s22_s0] ss:$0 sm:$0xff] }
   0x2   :  { %5 = vst [vmem:[%s23_s1] sm:$0x3] %v4_v0 }

// kernel: tile.26
= control target key start
LH: loop header
LB: loop body
LE: loop exit
PB: predicated region body
PF: predicated region fallthrough
CT: control target
= control target key end

     0   :  { %vm7_vm0 = vcmask 261120   ;;  %vm13_vm1 = vcmask 523520   ;;  %s39_s0 = inlined_call_operand.vmem [shape: f32[2,32], index: 0, kind: input, shape index: {}]   ;;  %s40_s1 = inlined_call_operand.vmem [shape: f32[1,64], index: 1, kind: output, shape index: {}]  }
   0x1   :  { %v4_v0 = vld [vmem:[%s39_s0] sm:$0x3]  ;;  %s22_s0 = smov 32  }
   0x2   :  { %5 = vst [vmem:[#allocation1] sm:$0x3] %v4_v0 }
   0x9   :  { %v10_v1 = vld [vmem:[#allocation1 + $0x1] sm:$0x1]   ;;  %v6_v2 = vld [vmem:[#allocation1] sm:$0x1]  }
   0xa   :  { %11 = vrot.lane.b32.xlu0 %v10_v1, %s22_s0  ;;  %8 = vst.msk [vmem:[#allocation0] sm:$0x1] %vm7_vm0, %v6_v2  }
  0x7c   :  { %v12_v3 = vpop.permute.xlu0 %11  }
  0x7d   :  { %14 = vst.msk [vmem:[#allocation0] sm:$0x1] %vm13_vm1, %v12_v3  }
  0x84   :  { %v18_v4 = vld [vmem:[#allocation0] sm:$0x1] }
  0x85   :  { %20 = vst [vmem:[%s40_s1] sm:$0x1] %v18_v4 }

// kernel: tile.33
= control target key start
LH: loop header
LB: loop body
LE: loop exit
PB: predicated region body
PF: predicated region fallthrough
CT: control target
= control target key end

     0   :  { %s51_s10 = smov 40   ;;  %s52_s11 = smov 24   ;;  %vm3_vm0 = vcmask 64512   ;;  %vm9_vm1 = vcmask 392512   ;;  %vm15_vm2 = vcmask 326912   ;;  %vm21_vm3 = vcmask 261312   ;;  %s87_s0 = inlined_call_operand.vmem [shape: f32[6,8], index: 0, kind: input, shape index: {}]   ;;  %s88_s1 = inlined_call_operand.vmem [shape: f32[48], index: 1, kind: output, shape index: {}]  }
   0x1   :  { %v41_v0 = vld [vmem:[%s87_s0 + $0x5] sm:$0x1]   ;;  %v43_v1 = vld [vmem:[%s87_s0 + $0x3] sm:$0x1]   ;;  %v42_v2 = vld [vmem:[%s87_s0 + $0x4] sm:$0x1]  }
   0x2   :  { %7 = vrot.lane.b32.xlu0 %v41_v0, %s51_s10  ;;  %19 = vrot.lane.b32.xlu1 %v43_v1, %s52_s11  ;;  %v44_v3 = vld [vmem:[%s87_s0 + $0x2] sm:$0x1]   ;;  %v2_v4 = vld [vmem:[%s87_s0] sm:$0x1]   ;;  %s53_s18 = smov 32   ;;  %s54_s19 = smov 16  }
   0x3   :  { %4 = vst.msk [vmem:[#allocation0] sm:$0x1] %vm3_vm0, %v2_v4   ;;  %v45_v5 = vld [vmem:[%s87_s0 + $0x1] sm:$0x1]   ;;  %s55_s0 = smov 8   ;;  %vm27_vm4 = vcmask 195712  }
   0x4   :  { %vm33_vm5 = vcmask 130112  }
   0x6   :  { %13 = vrot.lane.b32.xlu0 %v42_v2, %s53_s18  ;;  %25 = vrot.lane.b32.xlu1 %v44_v3, %s54_s19 }
   0xa   :  { %31 = vrot.lane.b32.xlu0 %v45_v5, %s55_s0 }
  0x74   :  { %v8_v6 = vpop.permute.xlu0 %7   ;;  %v20_v7 = vpop.permute.xlu1 %19  }
  0x75   :  { %10 = vst.msk [vmem:[#allocation0] sm:$0x1] %vm9_vm1, %v8_v6  }
  0x78   :  { %v14_v8 = vpop.permute.xlu0 %13   ;;  %v26_v9 = vpop.permute.xlu1 %25  }
  0x79   :  { %16 = vst.msk [vmem:[#allocation0] sm:$0x1] %vm15_vm2, %v14_v8  }
  0x7a   :  { %22 = vst.msk [vmem:[#allocation0] sm:$0x1] %vm21_vm3, %v20_v7  }
  0x7b   :  { %28 = vst.msk [vmem:[#allocation0] sm:$0x1] %vm27_vm4, %v26_v9  }
  0x7c   :  { %v32_v10 = vpop.permute.xlu0 %31  }
  0x7d   :  { %34 = vst.msk [vmem:[#allocation0] sm:$0x1] %vm33_vm5, %v32_v10  }
  0x84   :  { %v38_v11 = vld [vmem:[#allocation0] sm:$0x1] }
  0x85   :  { %40 = vst [vmem:[%s88_s1] sm:$0x1] %v38_v11 }

// kernel: tile.30
= control target key start
LH: loop header
LB: loop body
LE: loop exit
PB: predicated region body
PF: predicated region fallthrough
CT: control target
= control target key end

     0   :  { %s22_s0 = inlined_call_operand.vmem [shape: f32[8], index: 0, kind: input, shape index: {}]   ;;  %s23_s1 = inlined_call_operand.vmem [shape: f32[6,8], index: 1, kind: output, shape index: {}]  }
   0x1   :  { %v4_v0 = vld [vmem:[%s22_s0] ss:$0 sm:$0xff] }
   0x2   :  { %5 = vst [vmem:[%s23_s1] sm:$0xff] %v4_v0 }

// kernel: tile.34
= control target key start
LH: loop header
LB: loop body
LE: loop exit
PB: predicated region body
PF: predicated region fallthrough
CT: control target
= control target key end

     0   :  { %s22_s0 = inlined_call_operand.vmem [shape: f32[48], index: 0, kind: input, shape index: {}]   ;;  %s23_s1 = inlined_call_operand.vmem [shape: f32[2,48], index: 1, kind: output, shape index: {}]  }
   0x1   :  { %v4_v0 = vld [vmem:[%s22_s0] ss:$0 sm:$0xff] }
   0x2   :  { %5 = vst [vmem:[%s23_s1] sm:$0x3] %v4_v0 }

// kernel: tile.35
= control target key start
LH: loop header
LB: loop body
LE: loop exit
PB: predicated region body
PF: predicated region fallthrough
CT: control target
= control target key end

     0   :  { %vm7_vm0 = vcmask 392192   ;;  %vm13_vm1 = vcmask 785792   ;;  %s39_s0 = inlined_call_operand.vmem [shape: f32[2,48], index: 0, kind: input, shape index: {}]   ;;  %s40_s1 = inlined_call_operand.vmem [shape: f32[1,96], index: 1, kind: output, shape index: {}]  }
   0x1   :  { %v4_v0 = vld [vmem:[%s39_s0] sm:$0x3]  ;;  %s22_s0 = smov 48  }
   0x2   :  { %5 = vst [vmem:[#allocation1] sm:$0x3] %v4_v0 }
   0x9   :  { %v10_v1 = vld [vmem:[#allocation1 + $0x1] sm:$0x1]   ;;  %v6_v2 = vld [vmem:[#allocation1] sm:$0x1]  }
   0xa   :  { %11 = vrot.lane.b32.xlu0 %v10_v1, %s22_s0  ;;  %8 = vst.msk [vmem:[#allocation0] sm:$0x1] %vm7_vm0, %v6_v2  }
  0x7c   :  { %v12_v3 = vpop.permute.xlu0 %11  }
  0x7d   :  { %14 = vst.msk [vmem:[#allocation0] sm:$0x1] %vm13_vm1, %v12_v3  }
  0x84   :  { %v18_v4 = vld [vmem:[#allocation0] sm:$0x1] }
  0x85   :  { %20 = vst [vmem:[%s40_s1] sm:$0x1] %v18_v4 }

// kernel: _forward_impl.1
= control target key start
LH: loop header
LB: loop body
LE: loop exit
PB: predicated region body
PF: predicated region fallthrough
CT: control target
= control target key end

     0   :  { %v733_v0 = vmov 0.0|0.0   ;;  %vm734_vm0 = vmmov 0   ;;  %v735_v3 = vmov 0.0   ;;  %vm28_vm1 = vcmask 130048   ;;  %s1045_s0 = inlined_call_operand.vmem [shape: f32[1,16,128], index: 0, kind: input, shape index: {}]   ;;  %s1046_s1 = inlined_call_operand.vmem [shape: f32[24,16], index: 1, kind: input, shape index: {}]   ;;  %s1047_s2 = inlined_call_operand.vmem [shape: f32[128,384], index: 2, kind: input, shape index: {}]   ;;  %s1048_s3 = inlined_call_operand.vmem [shape: f32[64,384], index: 3, kind: input, shape index: {}]   ;;  %s1049_s4 = inlined_call_operand.vmem [shape: f32[1,64], index: 4, kind: input, shape index: {}]   ;;  %s1050_s5 = inlined_call_operand.vmem [shape: f32[1,96], index: 5, kind: input, shape index: {}]   ;;  %s1051_s6 = inlined_call_operand.vmem [shape: f32[1,6,96], index: 6, kind: output, shape index: {}]  }
   0x1   :  { %643 = vmatprep.subr.bf16.mxu0 %v733_v0  ;;  %v23_v1 = vld [vmem:[%s1045_s0] sm:$0xff]  ;;  %v24_v2 = vld [vmem:[%s1045_s0 + $0x8] sm:$0xff]  ;;  %574 = vmatprep.mubr.msk.f32.mxu0 %vm734_vm0, %v735_v3  ;;  %v121_v9 = vld [vmem:[%s1047_s2 + $0x18] sm:$0xff]  ;;  %vm360_vm3 = vcmask 523264   ;;  %vm524_vm5 = vcmask 783360  }
   0x2   :  { %v644_v4 = vpack.c.bf16 %v24_v2, %v23_v1  ;;  %v25_v5 = vld [vmem:[%s1046_s1] sm:$0xff]  ;;  %v119_v6 = vld [vmem:[%s1047_s2 + $0x8] sm:$0xff]  ;;  %230 = vmatprep.mubr.f32.mxu1 %v735_v3  ;;  %v120_v12 = vld [vmem:[%s1047_s2 + $0x10] sm:$0xff] }
   0x3   :  { %v122_v7 = vld [vmem:[%s1047_s2 + $0x20] sm:$0xff]  ;;  %v123_v13 = vld [vmem:[%s1047_s2 + $0x28] sm:$0xff]  ;;  %v125_v14 = vld [vmem:[%s1047_s2 + $0x38] sm:$0xff] }
   0x4   :  { %v118_v8 = vld [vmem:[%s1047_s2] sm:$0xff]  ;;  %645 = vmatpush3.bf16.msra.mxu0 %v644_v4  ;;  %v646_v10 = vpack.c.bf16 %v122_v7, %v119_v6  ;;  %v679_v15 = vpack.c.bf16 %v123_v13, %v120_v12  ;;  %v128_v16 = vld [vmem:[%s1047_s2 + $0x50] sm:$0xff]  ;;  %v127_v18 = vld [vmem:[%s1047_s2 + $0x48] sm:$0xff] }
   0x5   :  { %v648_v11 = vpack.c.bf16 %v121_v9, %v118_v8  ;;  %678 = vmatprep.subr.bf16.mxu0 %v733_v0  ;;  %v124_v17 = vld [vmem:[%s1047_s2 + $0x30] sm:$0xff]  ;;  %v650_v19 = vpack.c.bf16 %v128_v16, %v125_v14  ;;  %v126_v20 = vld [vmem:[%s1047_s2 + $0x40] sm:$0xff]  ;;  %v129_v21 = vld [vmem:[%s1047_s2 + $0x58] sm:$0xff] }
   0x6   :  { %647 = vmatprep.subr.bf16.mxu1 %v646_v10  ;;  %v131_v22 = vld [vmem:[%s1047_s2 + $0x68] sm:$0xff]  ;;  %v652_v24 = vpack.c.bf16 %v127_v18, %v124_v17  ;;  %v134_v25 = vld [vmem:[%s1047_s2 + $0x80] sm:$0xff]  ;;  %v682_v26 = vpack.c.bf16 %v129_v21, %v126_v20  ;;  %v133_v28 = vld [vmem:[%s1047_s2 + $0x78] sm:$0xff] }
   0x7   :  { %575 = vmatmul.mubr.msk.f32.vlgmr.msra.gmra.mrb[0].mxu0 %vm28_vm1, %v25_v5  ;;  %v26_v23 = vld [vmem:[%s1046_s1 + $0x8] sm:$0xff]  ;;  %649 = vmatpush1.bf16.msra.mxu1 %v648_v11  ;;  %v130_v27 = vld [vmem:[%s1047_s2 + $0x60] sm:$0xff]  ;;  %v132_v29 = vld [vmem:[%s1047_s2 + $0x70] sm:$0xff]  ;;  %v654_v30 = vpack.c.bf16 %v134_v25, %v131_v22 }
   0x8   :  { %577 = vmatprep.mubr.msk.f32.mxu0 %vm734_vm0, %v735_v3  ;;  %680 = vmatpush3.bf16.msra.mxu0 %v679_v15  ;;  %v135_v31 = vld [vmem:[%s1047_s2 + $0x88] sm:$0xff]  ;;  %v137_v32 = vld [vmem:[%s1047_s2 + $0x98] sm:$0xff]  ;;  %v140_v33 = vld [vmem:[%s1047_s2 + $0xb0] sm:$0xff]  ;;  %v656_v35 = vpack.c.bf16 %v133_v28, %v130_v27 }
   0x9   :  { %651 = vmatprep.subr.bf16.mxu1 %v650_v19  ;;  %681 = vmatprep.subr.bf16.mxu0 %v733_v0  ;;  %v27_v34 = vld [vmem:[%s1046_s1 + $0x10] sm:$0xff]  ;;  %v685_v36 = vpack.c.bf16 %v135_v31, %v132_v29  ;;  %v658_v37 = vpack.c.bf16 %v140_v33, %v137_v32  ;;  %v139_v39 = vld [vmem:[%s1047_s2 + $0xa8] sm:$0xff]  ;;  %v138_v40 = vld [vmem:[%s1047_s2 + $0xa0] sm:$0xff] }
   0xa   :  { %v136_v38 = vld [vmem:[%s1047_s2 + $0x90] sm:$0xff]  ;;  %v141_v41 = vld [vmem:[%s1047_s2 + $0xb8] sm:$0xff]  ;;  %v143_v42 = vld [vmem:[%s1047_s2 + $0xc8] sm:$0xff] }
   0xb   :  { %578 = vmatmul.mubr.msk.f32.gmra.mrb[2].mxu0 %vm28_vm1, %v26_v23  ;;  %653 = vmatpush1.bf16.msra.mxu1 %v652_v24  ;;  %v146_v43 = vld [vmem:[%s1047_s2 + $0xe0] sm:$0xff]  ;;  %v660_v44 = vpack.c.bf16 %v139_v39, %v136_v38  ;;  %v688_v45 = vpack.c.bf16 %v141_v41, %v138_v40  ;;  %v145_v48 = vld [vmem:[%s1047_s2 + $0xd8] sm:$0xff]  ;;  %v144_v49 = vld [vmem:[%s1047_s2 + $0xd0] sm:$0xff] }
   0xc   :  { %580 = vmatprep.mubr.msk.f32.mxu0 %vm734_vm0, %v735_v3  ;;  %683 = vmatpush3.bf16.msra.mxu0 %v682_v26  ;;  %v662_v46 = vpack.c.bf16 %v146_v43, %v143_v42  ;;  %v142_v47 = vld [vmem:[%s1047_s2 + $0xc0] sm:$0xff]  ;;  %v147_v50 = vld [vmem:[%s1047_s2 + $0xe8] sm:$0xff]  ;;  %v149_v51 = vld [vmem:[%s1047_s2 + $0xf8] sm:$0xff] }
   0xd   :  { %655 = vmatprep.subr.bf16.mxu1 %v654_v30  ;;  %684 = vmatprep.subr.bf16.mxu0 %v733_v0  ;;  %v152_v52 = vld [vmem:[%s1047_s2 + $0x110] sm:$0xff]  ;;  %v664_v53 = vpack.c.bf16 %v145_v48, %v142_v47  ;;  %v691_v54 = vpack.c.bf16 %v147_v50, %v144_v49  ;;  %v151_v57 = vld [vmem:[%s1047_s2 + $0x108] sm:$0xff]  ;;  %v150_v58 = vld [vmem:[%s1047_s2 + $0x100] sm:$0xff] }
   0xe   :  { %v666_v55 = vpack.c.bf16 %v152_v52, %v149_v51  ;;  %v148_v56 = vld [vmem:[%s1047_s2 + $0xf0] sm:$0xff]  ;;  %v153_v59 = vld [vmem:[%s1047_s2 + $0x118] sm:$0xff]  ;;  %v155_v60 = vld [vmem:[%s1047_s2 + $0x128] sm:$0xff] }
   0xf   :  { %581 = vmatmul.mubr.msk.f32.gmra.mrb[4].mxu0 %vm28_vm1, %v27_v34  ;;  %657 = vmatpush1.bf16.msra.mxu1 %v656_v35  ;;  %v158_v61 = vld [vmem:[%s1047_s2 + $0x140] sm:$0xff]  ;;  %v668_v62 = vpack.c.bf16 %v151_v57, %v148_v56  ;;  %v694_v63 = vpack.c.bf16 %v153_v59, %v150_v58  ;;  %v157_v4 = vld [vmem:[%s1047_s2 + $0x138] sm:$0xff]  ;;  %v156_v5 = vld [vmem:[%s1047_s2 + $0x130] sm:$0xff] }
  0x10   :  { %686 = vmatpush3.bf16.msra.mxu0 %v685_v36  ;;  %659 = vmatprep.subr.bf16.mxu1 %v658_v37  ;;  %v670_v1 = vpack.c.bf16 %v158_v61, %v155_v60  ;;  %v154_v2 = vld [vmem:[%s1047_s2 + $0x120] sm:$0xff]  ;;  %v159_v6 = vld [vmem:[%s1047_s2 + $0x148] sm:$0xff]  ;;  %v161_v7 = vld [vmem:[%s1047_s2 + $0x158] sm:$0xff] }
  0x11   :  { %687 = vmatprep.subr.bf16.mxu0 %v733_v0  ;;  %615 = vmatprep.mubr.msk.f32.mxu0 %vm734_vm0, %v735_v3  ;;  %v164_v8 = vld [vmem:[%s1047_s2 + $0x170] sm:$0xff]  ;;  %v672_v9 = vpack.c.bf16 %v157_v4, %v154_v2  ;;  %v697_v10 = vpack.c.bf16 %v159_v6, %v156_v5  ;;  %v163_v13 = vld [vmem:[%s1047_s2 + $0x168] sm:$0xff]  ;;  %v162_v14 = vld [vmem:[%s1047_s2 + $0x160] sm:$0xff] }
  0x12   :  { %v674_v11 = vpack.c.bf16 %v164_v8, %v161_v7  ;;  %v160_v12 = vld [vmem:[%s1047_s2 + $0x150] sm:$0xff]  ;;  %v165_v15 = vld [vmem:[%s1047_s2 + $0x178] sm:$0xff]  ;;  %v337_v18 = vld [vmem:[%s1048_s3 + $0x8] sm:$0xff] }
  0x13   :  { %661 = vmatpush1.bf16.msra.mxu1 %v660_v44  ;;  %v676_v16 = vpack.c.bf16 %v163_v13, %v160_v12  ;;  %v700_v17 = vpack.c.bf16 %v165_v15, %v162_v14  ;;  %v340_v19 = vld [vmem:[%s1048_s3 + $0x20] sm:$0xff]  ;;  %v339_v22 = vld [vmem:[%s1048_s3 + $0x18] sm:$0xff]  ;;  %v338_v23 = vld [vmem:[%s1048_s3 + $0x10] sm:$0xff] }
  0x14   :  { %689 = vmatpush3.bf16.msra.mxu0 %v688_v45  ;;  %663 = vmatprep.subr.bf16.mxu1 %v662_v46  ;;  %v702_v20 = vpack.c.bf16 %v340_v19, %v337_v18  ;;  %v336_v21 = vld [vmem:[%s1048_s3] sm:$0xff]  ;;  %v341_v24 = vld [vmem:[%s1048_s3 + $0x28] sm:$0xff]  ;;  %v343_v33 = vld [vmem:[%s1048_s3 + $0x38] sm:$0xff] }
  0x15   :  { %690 = vmatprep.subr.bf16.mxu0 %v733_v0  ;;  %v704_v25 = vpack.c.bf16 %v339_v22, %v336_v21  ;;  %v719_v26 = vpack.c.bf16 %v341_v24, %v338_v23  ;;  %v346_v34 = vld [vmem:[%s1048_s3 + $0x50] sm:$0xff]  ;;  %v345_v37 = vld [vmem:[%s1048_s3 + $0x48] sm:$0xff]  ;;  %v347_v39 = vld [vmem:[%s1048_s3 + $0x58] sm:$0xff] }
  0x16   :  { %v706_v35 = vpack.c.bf16 %v346_v34, %v343_v33  ;;  %v342_v36 = vld [vmem:[%s1048_s3 + $0x30] sm:$0xff]  ;;  %v349_v41 = vld [vmem:[%s1048_s3 + $0x68] sm:$0xff]  ;;  %v352_v42 = vld [vmem:[%s1048_s3 + $0x80] sm:$0xff] }
  0x17   :  { %665 = vmatpush1.bf16.msra.mxu1 %v664_v53  ;;  %v708_v38 = vpack.c.bf16 %v345_v37, %v342_v36  ;;  %v710_v43 = vpack.c.bf16 %v352_v42, %v349_v41  ;;  %v348_v44 = vld [vmem:[%s1048_s3 + $0x60] sm:$0xff]  ;;  %v351_v45 = vld [vmem:[%s1048_s3 + $0x78] sm:$0xff]  ;;  %v350_v46 = vld [vmem:[%s1048_s3 + $0x70] sm:$0xff] }
  0x18   :  { %692 = vmatpush3.bf16.msra.mxu0 %v691_v54  ;;  %667 = vmatprep.subr.bf16.mxu1 %v666_v55  ;;  %v712_v47 = vpack.c.bf16 %v351_v45, %v348_v44  ;;  %v353_v48 = vld [vmem:[%s1048_s3 + $0x88] sm:$0xff]  ;;  %v355_v50 = vld [vmem:[%s1048_s3 + $0x98] sm:$0xff]  ;;  %v358_v51 = vld [vmem:[%s1048_s3 + $0xb0] sm:$0xff] }
  0x19   :  { %693 = vmatprep.subr.bf16.mxu0 %v733_v0  ;;  %v725_v49 = vpack.c.bf16 %v353_v48, %v350_v46  ;;  %v714_v52 = vpack.c.bf16 %v358_v51, %v355_v50  ;;  %v354_v53 = vld [vmem:[%s1048_s3 + $0x90] sm:$0xff]  ;;  %v357_v54 = vld [vmem:[%s1048_s3 + $0xa8] sm:$0xff]  ;;  %v356_v55 = vld [vmem:[%s1048_s3 + $0xa0] sm:$0xff] }
  0x1a   :  { %v716_v56 = vpack.c.bf16 %v357_v54, %v354_v53  ;;  %v359_v57 = vld [vmem:[%s1048_s3 + $0xb8] sm:$0xff]  ;;  %v533_v61 = vld [vmem:[%s1049_s4] ss:$0 sm:$0xff] }
  0x1b   :  { %669 = vmatpush1.bf16.msra.mxu1 %v668_v62  ;;  %v728_v58 = vpack.c.bf16 %v359_v57, %v356_v55  ;;  %v536_v14 = vld [vmem:[%s1050_s5] ss:$0 sm:$0xff] }
  0x1c   :  { %695 = vmatpush3.bf16.msra.mxu0 %v694_v63  ;;  %671 = vmatprep.subr.bf16.mxu1 %v670_v1 }
  0x1d   :  { %696 = vmatprep.subr.bf16.mxu0 %v733_v0 }
  0x1f   :  { %673 = vmatpush1.bf16.msra.mxu1 %v672_v9 }
  0x20   :  { %698 = vmatpush3.bf16.msra.mxu0 %v697_v10  ;;  %675 = vmatprep.subr.bf16.mxu1 %v674_v11 }
  0x21   :  { %699 = vmatprep.subr.bf16.mxu0 %v733_v0 }
  0x23   :  { %677 = vmatpush1.bf16.msra.mxu1 %v676_v16 }
  0x24   :  { %701 = vmatpush3.bf16.msra.mxu0 %v700_v17  ;;  %703 = vmatprep.subr.bf16.mxu1 %v702_v20 }
  0x25   :  { %718 = vmatprep.subr.bf16.mxu0 %v733_v0 }
  0xda   :  { %v104_v27 = vpop.f32.mrb[0].mxu0 }
  0xdb   :  { %v576_v28 = vpop.f32.mrb[1].mxu0  ;;  %231 = vmatmul.mubr.f32.vlgmr.msra.gmra.mrb[0].mxu1 %v104_v27  ;;  %616 = vmatmul.mubr.f32.vlgmr.msra.gmra.mrb[6].mxu0 %v104_v27 }
  0xdc   :  { %235 = vmatprep.mubr.f32.mxu1 %v735_v3  ;;  %618 = vmatprep.mubr.msk.f32.mxu0 %vm734_vm0, %v735_v3 }
  0xdd   :  { %705 = vmatpush1.bf16.msra.mxu1 %v704_v25  ;;  %720 = vmatpush3.bf16.msra.mxu0 %v719_v26 }
  0xde   :  { %v109_v29 = vpop.f32.mrb[2].mxu0  ;;  %721 = vmatprep.subr.bf16.mxu0 %v733_v0  ;;  %707 = vmatprep.subr.bf16.mxu1 %v706_v35 }
  0xdf   :  { %v579_v30 = vpop.f32.mrb[3].mxu0  ;;  %236 = vmatmul.mubr.f32.gmra.mrb[2].mxu1 %v109_v29  ;;  %619 = vmatmul.mubr.f32.gmra.mrb[8].mxu0 %v109_v29 }
  0xe0   :  { %240 = vmatprep.mubr.f32.mxu1 %v735_v3  ;;  %621 = vmatprep.mubr.msk.f32.mxu0 %vm734_vm0, %v735_v3 }
  0xe1   :  { %709 = vmatpush1.bf16.msra.mxu1 %v708_v38 }
  0xe2   :  { %v114_v31 = vpop.f32.mrb[4].mxu0  ;;  %711 = vmatprep.subr.bf16.mxu1 %v710_v43 }
  0xe3   :  { %v582_v32 = vpop.f32.mrb[5].mxu0  ;;  %241 = vmatmul.mubr.f32.gmra.mrb[4].mxu1 %v114_v31  ;;  %622 = vmatmul.mubr.f32.gmra.mrb[10].mxu0 %v114_v31 }
  0xe4   :  { %428 = vmatprep.mubr.f32.mxu1 %v735_v3  ;;  %640 = vmatprep.mubr.msk.f32.mxu0 %vm734_vm0, %v735_v3  ;;  %v344_v3 = vld [vmem:[%s1048_s3 + $0x40] sm:$0xff] }
  0xe5   :  { %v722_v40 = vpack.c.bf16 %v347_v39, %v344_v3  ;;  %713 = vmatpush1.bf16.msra.mxu1 %v712_v47 }
  0xe6   :  { %715 = vmatprep.subr.bf16.mxu1 %v714_v52 }
  0xe7   :  { %723 = vmatpush3.bf16.msra.mxu0 %v722_v40 }
  0xe8   :  { %724 = vmatprep.subr.bf16.mxu0 %v733_v0 }
  0xe9   :  { %717 = vmatpush1.bf16.msra.mxu1 %v716_v56 }
  0xeb   :  { %726 = vmatpush3.bf16.msra.mxu0 %v725_v49 }
  0xec   :  { %727 = vmatprep.subr.bf16.mxu0 %v733_v0 }
  0xef   :  { %729 = vmatpush3.bf16.msra.mxu0 %v728_v58 }
 0x1ae   :  { %v232_v59 = vpop.f32.mrb[0].mxu1  ;;  %v311_v60 = vpop.f32.mrb[6].mxu0 }
 0x1af   :  { %v234_v62 = vpop.f32.mrb[1].mxu1  ;;  %v617_v63 = vpop.f32.mrb[7].mxu0  ;;  %v330_v1 = vadd.f32 %v533_v61, %v232_v59 }
 0x1b2   :  { %v237_v2 = vpop.f32.mrb[2].mxu1  ;;  %v315_v0 = vpop.f32.mrb[8].mxu0 }
 0x1b3   :  { %v238_v4 = vpop.f32.mrb[3].mxu1  ;;  %v620_v5 = vpop.f32.mrb[9].mxu0 }
 0x1b4   :  { %v331_v6 = vadd.f32 %v330_v1, %v238_v4 }
 0x1b6   :  { %v242_v7 = vpop.f32.mrb[4].mxu1  ;;  %v319_v8 = vpop.f32.mrb[10].mxu0 }
 0x1b7   :  { %v332_v9 = vadd.f32 %v331_v6, %v319_v8  ;;  %v243_v10 = vpop.f32.mrb[5].mxu1  ;;  %v623_v11 = vpop.f32.mrb[11].mxu0 }
 0x1b9   :  { %vm333_vm2 = vcmp.gt.f32.partialorder %v332_v9, 0.0  ;;  %v334_v12 = vmul.f32 0.2, %v332_v9 }
 0x1bb   :  { %v335_v13 = vsel %vm333_vm2, %v332_v9, %v334_v12 }
 0x1bc   :  { %534 = vmatmul.mubr.msk.f32.vlgmr.msra.gmra.mrb[6].mxu1 %vm360_vm3, %v335_v13  ;;  %641 = vmatmul.mubr.msk.f32.vlgmr.msra.gmra.mrb[12].mxu0 %vm360_vm3, %v335_v13 }
 0x28f   :  { %v430_v15 = vpop.f32.mrb[6].mxu1  ;;  %v501_v16 = vpop.f32.mrb[12].mxu0 }
 0x290   :  { %v512_v17 = vadd.f32 %v536_v14, %v430_v15  ;;  %v432_v18 = vpop.f32.mrb[7].mxu1  ;;  %v642_v19 = vpop.f32.mrb[13].mxu0  ;;  %v518_v21 = vrot.slane %v501_v16, 2 }
 0x291   :  { %v514_v20 = vrot.slane %v432_v18, 1 }
 0x293   :  { %v516_v22 = vadd.f32 %v514_v20, %v512_v17 }
 0x295   :  { %v520_v23 = vadd.f32 %v518_v21, %v516_v22 }
 0x297   :  { %vm521_vm4 = vcmp.gt.f32.partialorder %v520_v23, 0.0  ;;  %v522_v24 = vmul.f32 0.1, %v520_v23 }
 0x299   :  { %v523_v25 = vsel %vm521_vm4, %v520_v23, %v522_v24 }
 0x29a   :  { %525 = vst.msk [vmem:[%s1051_s6] sm:$0x3f] %vm524_vm5, %v523_v25 }

</bundles_post_ra>
